<compile_context>
chip_gen: v7x
topology: tpu7x:2x2x1
jax: 0.10.0
libtpu: 0.0.40
codegen_flags: <defaults>
</compile_context>

<pallas_src>
import jax
import jax.numpy as jnp
from jax.experimental import pallas as pl
from jax.experimental.pallas import tpu as pltpu


def model_kernel(ids_ref, emb_ref, w_ref, b_ref, o_ref):
    # ids_ref: (bm, S) int32 | emb_ref: (V, D) f32 | w_ref: (D, 3) f32
    # b_ref:   (1, 3)  f32   | o_ref:   (bm, 3) f32
    ids = ids_ref[...]                                        # (bm, S)
    bm, S = ids.shape
    V = emb_ref.shape[0]

    # Fused table T = (E @ W + b) / S.  Tiny (30x32)@(32x3) matmul recomputed
    # per grid step (negligible) so the whole forward stays inside one HLO op.
    table = (jnp.dot(emb_ref[...], w_ref[...],
                     preferred_element_type=jnp.float32)
             + b_ref[...]) * jnp.float32(1.0 / S)             # (V, 3)

    # Per-row token histogram: counts[b, v] = #{s : ids[b, s] == v}.
    # Pure VPU int32 compare/add on one (bm, V) iota; single cast after loop.
    iota_v = jax.lax.broadcasted_iota(jnp.int32, (bm, V), 1)  # (bm, V)
    counts = jnp.zeros((bm, V), jnp.int32)
    for s in range(S):  # static Python unroll (S = sentence_length, small)
        counts = counts + (ids[:, s:s + 1] == iota_v).astype(jnp.int32)

    # mean_S(Embedding(x)) @ W + b  ==  counts @ T   (exact fold of bias, 1/S).
    logits = jnp.dot(counts.astype(jnp.float32), table,
                     preferred_element_type=jnp.float32)      # (bm, 3)
    o_ref[...] = jax.nn.sigmoid(logits)

    # TODO(synk): training branch (CrossEntropyLoss on sigmoid outputs when
    # y is not None) is not implemented; only the y=None inference path.


@jax.jit
def torch_model_forward(ids, emb_table, w, b):
    B, S = ids.shape
    V, D = emb_table.shape
    b2 = jnp.reshape(b, (1, 3)).astype(jnp.float32)

    # Batch tiling: one step at small B; 128-row tiles (multiple of the 8-row
    # sublane) at large B so the "parallel" grid axis shards across v7x's two
    # TensorCores.  Pad B up to a tile multiple if needed (pad rows use token
    # 0 -- harmless, sliced off below).
    bm = min(max(B, 8), 128)
    bm = ((bm + 7) // 8) * 8
    Bp = ((B + bm - 1) // bm) * bm
    ids_p = ids if Bp == B else jnp.pad(ids, ((0, Bp - B), (0, 0)))

    out = pl.pallas_call(
        model_kernel,
        out_shape=jax.ShapeDtypeStruct((Bp, 3), jnp.float32),
        grid=(Bp // bm,),
        in_specs=[
            pl.BlockSpec((bm, S), lambda i: (i, 0)),   # token ids tile
            pl.BlockSpec((V, D), lambda i: (0, 0)),    # embedding table (full)
            pl.BlockSpec((D, 3), lambda i: (0, 0)),    # classifier weight
            pl.BlockSpec((1, 3), lambda i: (0, 0)),    # classifier bias
        ],
        out_specs=pl.BlockSpec((bm, 3), lambda i: (i, 0)),
        compiler_params=pltpu.CompilerParams(
            dimension_semantics=("parallel",)),
    )(ids_p, emb_table, w, b2)
    return out[:B]


if __name__ == "__main__":
    # Module hyperparameters (small, consistent with the PyTorch __init__).
    vector_dim = 32          # D
    sentence_length = 8      # S  (AvgPool1d kernel size)
    vocab_size = 30          # len(vocab) -> Embedding rows
    batch = 8                # B

    key = jax.random.PRNGKey(0)
    k_ids, k_emb, k_w, k_b = jax.random.split(key, 4)

    # Deterministic synthetic parameters (no checkpoint loading).
    emb_table = jax.random.normal(k_emb, (vocab_size, vector_dim), jnp.float32) * 0.1
    w = jax.random.normal(k_w, (vector_dim, 3), jnp.float32) * 0.1
    b = jax.random.normal(k_b, (3,), jnp.float32) * 0.1

    # Deterministic token ids in [0, vocab_size), matching nn.Embedding's contract.
    ids = jax.random.randint(k_ids, (batch, sentence_length), 0, vocab_size, jnp.int32)

    y_pred = torch_model_forward(ids, emb_table, w, b)
    jax.block_until_ready(y_pred)

    assert y_pred.shape == (batch, 3)
    assert bool(jnp.all(jnp.isfinite(y_pred)))
    print("KERNEL_OK")
</pallas_src>

<mosaic_0001>
module attributes {stable_mosaic.version = 11 : i64} {
  func.func @model_kernel(%arg0: i32, %arg1: memref<8x8xi32, #tpu.memory_space<vmem>>, %arg2: memref<30x32xf32, #tpu.memory_space<vmem>>, %arg3: memref<32x3xf32, #tpu.memory_space<vmem>>, %arg4: memref<1x3xf32, #tpu.memory_space<vmem>>, %arg5: memref<8x3xf32, #tpu.memory_space<vmem>>) attributes {dimension_semantics = [#tpu.dimension_semantics<parallel>], iteration_bounds = array<i64: 1>, scalar_prefetch = 0 : i64, scratch_operands = 0 : i64, tpu.core_type = #tpu.core_type<tc>, window_params = [{transform_indices = @transform_0, window_bounds = array<i64: 8, 8>}, {pipeline_mode = #tpu.pipeline_mode<synchronous>, transform_indices = @transform_1, window_bounds = array<i64: 30, 32>}, {pipeline_mode = #tpu.pipeline_mode<synchronous>, transform_indices = @transform_2, window_bounds = array<i64: 32, 3>}, {pipeline_mode = #tpu.pipeline_mode<synchronous>, transform_indices = @transform_3, window_bounds = array<i64: 1, 3>}, {transform_indices = @transform_4, window_bounds = array<i64: 8, 3>}]} {
    %c0 = arith.constant 0 : index
    %c0_0 = arith.constant 0 : index
    %0 = vector.load %arg1[%c0, %c0_0] : memref<8x8xi32, #tpu.memory_space<vmem>>, vector<8x8xi32>
    %c0_1 = arith.constant 0 : index
    %c0_2 = arith.constant 0 : index
    %1 = vector.load %arg2[%c0_1, %c0_2] : memref<30x32xf32, #tpu.memory_space<vmem>>, vector<30x32xf32>
    %c0_3 = arith.constant 0 : index
    %c0_4 = arith.constant 0 : index
    %2 = vector.load %arg3[%c0_3, %c0_4] : memref<32x3xf32, #tpu.memory_space<vmem>>, vector<32x3xf32>
    %cst = arith.constant dense<0.000000e+00> : vector<30x3xf32>
    %3 = tpu.matmul %1, %2, %cst {dimension_numbers = #tpu.dot_dimension_numbers<[1], [0], [0], [1], [0, 0, 1, 1], [], []>} : vector<30x32xf32>, vector<32x3xf32>, vector<30x3xf32> -> vector<30x3xf32>
    %c0_5 = arith.constant 0 : index
    %c0_6 = arith.constant 0 : index
    %4 = vector.load %arg4[%c0_5, %c0_6] : memref<1x3xf32, #tpu.memory_space<vmem>>, vector<1x3xf32>
    %5 = vector.broadcast %4 : vector<1x3xf32> to vector<30x3xf32>
    %6 = arith.addf %3, %5 : vector<30x3xf32>
    %cst_7 = arith.constant 1.250000e-01 : f32
    %7 = vector.broadcast %cst_7 : f32 to vector<30x3xf32>
    %8 = arith.mulf %6, %7 : vector<30x3xf32>
    %9 = tpu.iota {dimensions = array<i32: 1>} : vector<8x30xi32>
    %c0_i32 = arith.constant 0 : i32
    %10 = vector.broadcast %c0_i32 : i32 to vector<8x30xi32>
    %11 = vector.extract_strided_slice %0 {offsets = [0, 0], sizes = [8, 1], strides = [1, 1]} : vector<8x8xi32> to vector<8x1xi32>
    %12 = vector.broadcast %11 : vector<8x1xi32> to vector<8x30xi32>
    %13 = arith.cmpi eq, %12, %9 : vector<8x30xi32>
    %14 = arith.extui %13 : vector<8x30xi1> to vector<8x30xi32>
    %15 = arith.addi %10, %14 : vector<8x30xi32>
    %16 = vector.extract_strided_slice %0 {offsets = [0, 1], sizes = [8, 1], strides = [1, 1]} : vector<8x8xi32> to vector<8x1xi32>
    %17 = vector.broadcast %16 : vector<8x1xi32> to vector<8x30xi32>
    %18 = arith.cmpi eq, %17, %9 : vector<8x30xi32>
    %19 = arith.extui %18 : vector<8x30xi1> to vector<8x30xi32>
    %20 = arith.addi %15, %19 : vector<8x30xi32>
    %21 = vector.extract_strided_slice %0 {offsets = [0, 2], sizes = [8, 1], strides = [1, 1]} : vector<8x8xi32> to vector<8x1xi32>
    %22 = vector.broadcast %21 : vector<8x1xi32> to vector<8x30xi32>
    %23 = arith.cmpi eq, %22, %9 : vector<8x30xi32>
    %24 = arith.extui %23 : vector<8x30xi1> to vector<8x30xi32>
    %25 = arith.addi %20, %24 : vector<8x30xi32>
    %26 = vector.extract_strided_slice %0 {offsets = [0, 3], sizes = [8, 1], strides = [1, 1]} : vector<8x8xi32> to vector<8x1xi32>
    %27 = vector.broadcast %26 : vector<8x1xi32> to vector<8x30xi32>
    %28 = arith.cmpi eq, %27, %9 : vector<8x30xi32>
    %29 = arith.extui %28 : vector<8x30xi1> to vector<8x30xi32>
    %30 = arith.addi %25, %29 : vector<8x30xi32>
    %31 = vector.extract_strided_slice %0 {offsets = [0, 4], sizes = [8, 1], strides = [1, 1]} : vector<8x8xi32> to vector<8x1xi32>
    %32 = vector.broadcast %31 : vector<8x1xi32> to vector<8x30xi32>
    %33 = arith.cmpi eq, %32, %9 : vector<8x30xi32>
    %34 = arith.extui %33 : vector<8x30xi1> to vector<8x30xi32>
    %35 = arith.addi %30, %34 : vector<8x30xi32>
    %36 = vector.extract_strided_slice %0 {offsets = [0, 5], sizes = [8, 1], strides = [1, 1]} : vector<8x8xi32> to vector<8x1xi32>
    %37 = vector.broadcast %36 : vector<8x1xi32> to vector<8x30xi32>
    %38 = arith.cmpi eq, %37, %9 : vector<8x30xi32>
    %39 = arith.extui %38 : vector<8x30xi1> to vector<8x30xi32>
    %40 = arith.addi %35, %39 : vector<8x30xi32>
    %41 = vector.extract_strided_slice %0 {offsets = [0, 6], sizes = [8, 1], strides = [1, 1]} : vector<8x8xi32> to vector<8x1xi32>
    %42 = vector.broadcast %41 : vector<8x1xi32> to vector<8x30xi32>
    %43 = arith.cmpi eq, %42, %9 : vector<8x30xi32>
    %44 = arith.extui %43 : vector<8x30xi1> to vector<8x30xi32>
    %45 = arith.addi %40, %44 : vector<8x30xi32>
    %46 = vector.extract_strided_slice %0 {offsets = [0, 7], sizes = [8, 1], strides = [1, 1]} : vector<8x8xi32> to vector<8x1xi32>
    %47 = vector.broadcast %46 : vector<8x1xi32> to vector<8x30xi32>
    %48 = arith.cmpi eq, %47, %9 : vector<8x30xi32>
    %49 = arith.extui %48 : vector<8x30xi1> to vector<8x30xi32>
    %50 = arith.addi %45, %49 : vector<8x30xi32>
    %51 = arith.sitofp %50 : vector<8x30xi32> to vector<8x30xf32>
    %cst_8 = arith.constant dense<0.000000e+00> : vector<8x3xf32>
    %52 = tpu.matmul %51, %8, %cst_8 {dimension_numbers = #tpu.dot_dimension_numbers<[1], [0], [0], [1], [0, 0, 1, 1], [], []>} : vector<8x30xf32>, vector<30x3xf32>, vector<8x3xf32> -> vector<8x3xf32>
    %53 = arith.negf %52 : vector<8x3xf32>
    %54 = math.exp %53 : vector<8x3xf32>
    %cst_9 = arith.constant 1.000000e+00 : f32
    %55 = vector.broadcast %cst_9 : f32 to vector<8x3xf32>
    %56 = arith.addf %55, %54 : vector<8x3xf32>
    %57 = arith.divf %55, %56 : vector<8x3xf32>
    %c0_10 = arith.constant 0 : index
    %c0_11 = arith.constant 0 : index
    %58 = vector.load %arg5[%c0_10, %c0_11] : memref<8x3xf32, #tpu.memory_space<vmem>>, vector<8x3xf32>
    tpu.vector_store %arg5[%c0_10, %c0_11], %57 {strides = array<i32>} : memref<8x3xf32, #tpu.memory_space<vmem>>, vector<8x3xf32>,
    return
  }
  func.func @transform_0(%arg0: i32) -> (i32, i32) {
    %c0_i32 = arith.constant 0 : i32
    %c0_i32_0 = arith.constant 0 : i32
    return %arg0, %c0_i32 : i32, i32
  }
  func.func @transform_1(%arg0: i32) -> (i32, i32) {
    %c0_i32 = arith.constant 0 : i32
    %c0_i32_0 = arith.constant 0 : i32
    %c0_i32_1 = arith.constant 0 : i32
    return %c0_i32, %c0_i32_0 : i32, i32
  }
  func.func @transform_2(%arg0: i32) -> (i32, i32) {
    %c0_i32 = arith.constant 0 : i32
    %c0_i32_0 = arith.constant 0 : i32
    %c0_i32_1 = arith.constant 0 : i32
    return %c0_i32, %c0_i32_0 : i32, i32
  }
  func.func @transform_3(%arg0: i32) -> (i32, i32) {
    %c0_i32 = arith.constant 0 : i32
    %c0_i32_0 = arith.constant 0 : i32
    %c0_i32_1 = arith.constant 0 : i32
    return %c0_i32, %c0_i32_0 : i32, i32
  }
  func.func @transform_4(%arg0: i32) -> (i32, i32) {
    %c0_i32 = arith.constant 0 : i32
    %c0_i32_0 = arith.constant 0 : i32
    return %arg0, %c0_i32 : i32, i32
  }
}

</mosaic_0001>

<bundles_post_ra>
// kernel: torch_model_forward.1
= control target key start
LH: loop header
LB: loop body
LE: loop exit
PB: predicated region body
PF: predicated region fallthrough
CT: control target
= control target key end

     0   :  { %vm33_vm0 = vcmask 261120   ;;  %v361_v3 = vmov 2   ;;  %v362_v4 = vmov 0   ;;  %v363_v10 = vmov 3   ;;  %s444_s2 = inlined_call_operand.vmem [shape: f32[32,3], index: 2, kind: input, shape index: {}]   ;;  %s445_s1 = inlined_call_operand.vmem [shape: f32[30,32], index: 1, kind: input, shape index: {}]   ;;  %s446_s0 = inlined_call_operand.vmem [shape: s32[8,8], index: 0, kind: input, shape index: {}]   ;;  %s447_s3 = inlined_call_operand.vmem [shape: f32[1,3], index: 3, kind: input, shape index: {}]   ;;  %s448_s4 = inlined_call_operand.vmem [shape: f32[8,3], index: 4, kind: output, shape index: {}]  }
   0x1   :  { %v22_v0 = vld [vmem:[%s444_s2] sm:$0xff]  ;;  %v23_v1 = vld [vmem:[%s444_s2 + $0x8] sm:$0xff]  ;;  %v24_v2 = vld [vmem:[%s444_s2 + $0x10] sm:$0xff]  ;;  %350 = vset.pattern.permute.xlu1 %v361_v3  ;;  %348 = vset.pattern.permute.xlu0 %v362_v4  ;;  %v364_v13 = vmov 1   ;;  %v365_v15 = vmov 4   ;;  %v366_v16 = vmov 5   ;;  %v135_v22 = vlaneseq }
   0x2   :  { %v321_v5 = vpack.c.bf16 %v23_v1, %v22_v0  ;;  %v25_v6 = vld [vmem:[%s444_s2 + $0x18] sm:$0xff]  ;;  %v18_v7 = vld [vmem:[%s445_s1] sm:$0xff]  ;;  %v19_v11 = vld [vmem:[%s445_s1 + $0x8] sm:$0xff]  ;;  %v367_v17 = vmov 6   ;;  %v368_v18 = vmov 7   ;;  %v369_v19 = vmov 0.0|0.0  }
   0x3   :  { %v325_v8 = vpack.c.bf16 %v25_v6, %v24_v2  ;;  %304 = vmatprep.mubr.msk.f32.mxu0 %vm33_vm0, %v18_v7  ;;  %v17_v9 = vld [vmem:[%s446_s0] sm:$0xff]  ;;  %v20_v12 = vld [vmem:[%s445_s1 + $0x10] sm:$0xff]  ;;  %v21_v14 = vld [vmem:[%s445_s1 + $0x18] sm:$0x3f]  ;;  %329 = vmatprep.subr.bf16.mxu1 %v369_v19  ;;  %vm370_vm1 = vmmov 0   ;;  %v371_v20 = vmov 0.0  }
   0x4   :  { %322 = vmatprep.subr.bf16.mxu0 %v321_v5  ;;  %149 = vperm.xlu1 %350, %v17_v9   ;;  %v136_v23 = vand.u32 127, %v135_v22  ;;  %v275_v40 = vld [vmem:[%s447_s3] ss:$0 sm:$0xff]  ;;  %vm189_vm10 = vcmask 1045504   ;;  %vm372_vm11 = vmmov 1   ;;  %vm185_vm13 = vcmask 244736  }
   0x5   :  { %324 = vmatpush3.bf16.msra.mxu0 %v321_v5  ;;  %138 = vperm.xlu0 %348, %v17_v9   ;;  %vm334_vm12 = vmpackc.low %vm189_vm10, %vm372_vm11  ;;  %vm269_vm14 = vcmask 23552  }
   0x6   :  { %326 = vmatprep.subr.bf16.mxu0 %v325_v8  ;;  %318 = vmatprep.mubr.msk.f32.mxu1 %vm370_vm1, %v371_v20 }
   0x8   :  { %351 = vset.pattern.permute.xlu1 %v363_v10 }
   0x9   :  { %328 = vmatpush3.bf16.msra.mxu0 %v325_v8  ;;  %155 = vperm.xlu1 %351, %v17_v9  }
   0xa   :  { %349 = vset.pattern.permute.xlu0 %v364_v13 }
   0xb   :  { %143 = vperm.xlu0 %349, %v17_v9  }
   0xc   :  { %305 = vmatmul.mubr.msk.f32.vlgmr.msra.gmra.mrb[0].mxu0 %vm33_vm0, %v19_v11 }
   0xd   :  { %307 = vmatprep.mubr.msk.f32.mxu0 %vm33_vm0, %v20_v12  ;;  %352 = vset.pattern.permute.xlu1 %v365_v15 }
   0xe   :  { %161 = vperm.xlu1 %352, %v17_v9  }
   0xf   :  { %353 = vset.pattern.permute.xlu0 %v366_v16 }
  0x10   :  { %308 = vmatmul.mubr.msk.f32.gmra.mrb[2].mxu0 %vm33_vm0, %v21_v14  ;;  %167 = vperm.xlu0 %353, %v17_v9  }
  0x12   :  { %354 = vset.pattern.permute.xlu1 %v367_v17 }
  0x13   :  { %173 = vperm.xlu1 %354, %v17_v9  }
  0x14   :  { %356 = vset.pattern.permute.xlu0 %v368_v18 }
  0x17   :  { %355 = vset.pattern.permute.xlu1 %v368_v18 }
  0x18   :  { %179 = vperm.xlu1 %355, %v17_v9  }
  0x83   :  { %v150_v24 = vpop.permute.xlu1 %149 }
  0x84   :  { %v139_v21 = vpop.permute.xlu0 %138  ;;  %vm151_vm4 = vcmp.eq.s32.totalorder %v150_v24, %v136_v23 }
  0x85   :  { %vm140_vm2 = vcmp.eq.s32.totalorder %v139_v21, %v136_v23  ;;  %v152_v30 = vsel %vm151_vm4, 1, %v362_v4 }
  0x86   :  { %v141_v26 = vsel %vm140_vm2, 1, %v362_v4 }
  0x88   :  { %v156_v27 = vpop.permute.xlu1 %155 }
  0x89   :  { %vm157_vm5 = vcmp.eq.s32.totalorder %v156_v27, %v136_v23 }
  0x8a   :  { %v144_v25 = vpop.permute.xlu0 %143  ;;  %v158_v33 = vsel %vm157_vm5, 1, %v362_v4 }
  0x8b   :  { %vm145_vm3 = vcmp.eq.s32.totalorder %v144_v25, %v136_v23 }
  0x8c   :  { %v146_v28 = vsel %vm145_vm3, 1, %v362_v4 }
  0x8d   :  { %v147_v29 = vadd.s32 %v146_v28, %v141_v26  ;;  %v162_v31 = vpop.permute.xlu1 %161 }
  0x8e   :  { %vm163_vm6 = vcmp.eq.s32.totalorder %v162_v31, %v136_v23 }
  0x8f   :  { %v153_v32 = vadd.s32 %v152_v30, %v147_v29  ;;  %v168_v34 = vpop.permute.xlu0 %167  ;;  %v164_v36 = vsel %vm163_vm6, 1, %v362_v4 }
  0x90   :  { %vm169_vm7 = vcmp.eq.s32.totalorder %v168_v34, %v136_v23 }
  0x91   :  { %v159_v35 = vadd.s32 %v158_v33, %v153_v32  ;;  %v170_v39 = vsel %vm169_vm7, 1, %v362_v4 }
  0x92   :  { %v174_v37 = vpop.permute.xlu1 %173 }
  0x93   :  { %v165_v38 = vadd.s32 %v164_v36, %v159_v35  ;;  %vm175_vm8 = vcmp.eq.s32.totalorder %v174_v37, %v136_v23 }
  0x94   :  { %v176_v46 = vsel %vm175_vm8, 1, %v362_v4 }
  0x95   :  { %v171_v43 = vadd.s32 %v170_v39, %v165_v38 }
  0x97   :  { %v180_v41 = vpop.permute.xlu1 %179  ;;  %v177_v51 = vadd.s32 %v176_v46, %v171_v43 }
  0x98   :  { %vm181_vm9 = vcmp.eq.s32.totalorder %v180_v41, %v136_v23 }
  0x99   :  { %v182_v54 = vsel %vm181_vm9, 1, %v362_v4 }
  0x9a   :  { %v183_v59 = vadd.s32 %v182_v54, %v177_v51 }
  0x9c   :  { %v184_v61 = vcvt.s32.f32 %v183_v59 }
  0xdf   :  { %v306_v42 = vpop.f32.mrb[0].mxu0 }
  0xe0   :  { %v118_v44 = vadd.f32 %v306_v42, %v275_v40  ;;  %v112_v45 = vpop.f32.mrb[1].mxu0 }
  0xe1   :  { %v113_v47 = vadd.f32 %v275_v40, %v112_v45 }
  0xe2   :  { %v132_v48 = vmul.f32 0.125, %v118_v44 }
  0xe3   :  { %v131_v49 = vmul.f32 0.125, %v113_v47  ;;  %v309_v50 = vpop.f32.mrb[2].mxu0 }
  0xe4   :  { %v128_v52 = vadd.f32 %v309_v50, %v275_v40  ;;  %v122_v53 = vpop.f32.mrb[3].mxu0 }
  0xe5   :  { %v123_v55 = vadd.f32 %v275_v40, %v122_v53  ;;  %v330_v56 = vpack.c.bf16 %v132_v48, %v131_v49 }
  0xe6   :  { %v134_v57 = vmul.f32 0.125, %v128_v52 }
  0xe7   :  { %v133_v58 = vmul.f32 0.125, %v123_v55  ;;  %331 = vmatpush3.bf16.msra.mxu1 %v330_v56 }
  0xe8   :  { %332 = vmatprep.subr.bf16.mxu1 %v369_v19 }
  0xe9   :  { %v333_v60 = vpack.c.bf16 %v134_v57, %v133_v58 }
  0xeb   :  { %335 = vmatpush3.bf16.msk.msra.mxu1 %vm334_vm12, %v333_v60 }
  0xee   :  { %319 = vmatmul.mubr.msk.f32.vlgmr.msra.gmra.mrb[0].mxu1 %vm185_vm13, %v184_v61 }
 0x1c1   :  { %v259_v62 = vpop.f32.mrb[0].mxu1 }
 0x1c2   :  { %v282_v63 = vmul.f32 -1.442695, %v259_v62  ;;  %v320_v0 = vpop.f32.mrb[1].mxu1 }
 0x1c4   :  { %357 = vpow2.f32 %v282_v63 }
 0x1ce   :  { %v358_v1 = vpop.eup %357 }
 0x1cf   :  { %v266_v2 = vadd.f32 1.0, %v358_v1 }
 0x1d1   :  { %359 = vrcp.f32 %v266_v2 }
 0x1db   :  { %v360_v3 = vpop.eup %359 }
 0x1dc   :  { %270 = vst.msk [vmem:[%s448_s4] sm:$0xff] %vm269_vm14, %v360_v3 }

</bundles_post_ra>
